<compile_context>
chip_gen: v6e
topology: v6e:2x2x1
jax: 0.10.0
libtpu: 0.0.40
codegen_flags: <defaults>
</compile_context>

<pallas_src>
import numpy as np
import jax
import jax.numpy as jnp
from jax import lax
from jax.experimental import pallas as pl
from jax.experimental.pallas import tpu as pltpu


def _round_up(x, m):
    return ((x + m - 1) // m) * m


# ----------------------------------------------------------------------------
# Fused kernel: shared-slab conv dot + masked global max-pool + block-diag FC
# ----------------------------------------------------------------------------
def _make_fused_kernel(B, R_pad, C_all):
    def kernel(slab_ref, mask_ref, xnd_ref, wconv_ref, wfc_ref, bfc_ref, o_ref):
        # All convolutions, all batch rows: one MXU dot (M=B*R_pad, K=K_max*Cin, N=n_convs*Cout)
        y = jnp.dot(slab_ref[...], wconv_ref[...],
                    preferred_element_type=jnp.float32)          # [B*R_pad, C_all]
        # -inf on rows t >= lout_K for each kernel-size column group (and row padding)
        y = y + mask_ref[...]
        # Global MaxPool1d over valid time steps, per batch element
        pooled = jnp.max(y.reshape(B, R_pad, C_all), axis=1)     # [B, C_all]
        # [seq_pooled | x_vector | x_description] -> one block-diagonal FC producing the
        # already-concatenated [seqs, network, description] output (padded to 128 lanes).
        feats = jnp.concatenate([pooled, xnd_ref[...]], axis=1)  # [B, D_in]
        z = jnp.dot(feats, wfc_ref[...],
                    preferred_element_type=jnp.float32) + bfc_ref[...]
        o_ref[...] = jnp.where(z >= 0, z, 0.01 * z)              # LeakyReLU (PyTorch default slope)

    return kernel


# ----------------------------------------------------------------------------
# BioDataEncoder forward (feature order: seqs, network, description)
# ----------------------------------------------------------------------------
def bio_data_encoder_forward(params, x_ncl, x_description, x_vector):
    B, Cin, L = x_ncl.shape
    kernel_sizes = [int(w.shape[0]) for (w, _) in params["convs"]]
    n_convs = len(kernel_sizes)
    Cout = int(params["convs"][0][0].shape[2])
    hidden = int(params["fc_seq_w"].shape[1])
    net_dim = int(params["fc_network_w"].shape[0])
    desc_dim = int(params["fc_description_w"].shape[0])

    K_max, K_min = max(kernel_sizes), min(kernel_sizes)
    C_all = n_convs * Cout
    R = L - K_min + 1                      # longest valid conv output length
    R_pad = _round_up(R, 8)                # sublane-aligned rows per batch element
    out_dim = 3 * hidden
    out_pad = _round_up(out_dim, 128)      # lane-dense output store
    D_in = C_all + net_dim + desc_dim

    # ---- host-side im2col slab: column (k*Cin + c) holds x[b, t+k, c] ------------------------
    x_blc = jnp.transpose(x_ncl, (0, 2, 1))                        # NCL -> [B, L, Cin]
    pad_L = max(0, (R_pad - 1) + K_max - L)                        # zero-pad so all slices exist
    x_padded = jnp.pad(x_blc, ((0, 0), (0, pad_L), (0, 0)))
    slab = jnp.concatenate([x_padded[:, k:k + R_pad, :] for k in range(K_max)],
                           axis=2)                                 # [B, R_pad, K_max*Cin]
    slab_flat = slab.reshape(B * R_pad, K_max * Cin)               # batch folded into M

    # ---- additive -inf mask for invalid (out-of-range) rows per kernel-size column group ----
    lout_per_col = np.repeat(np.array([L - K + 1 for K in kernel_sizes]), Cout)   # [C_all]
    t_idx = np.arange(R_pad)[:, None]
    mask_1 = np.where(t_idx < lout_per_col[None, :], 0.0, -np.inf).astype(np.float32)
    mask = jnp.asarray(np.tile(mask_1, (B, 1)))                    # [B*R_pad, C_all]

    # ---- packed conv weight: all kernels share the slab; smaller K occupy a row prefix -------
    W_conv = jnp.zeros((K_max * Cin, C_all), jnp.float32)
    for i, (w_kco, _) in enumerate(params["convs"]):               # w_kco: [K, Cin, Cout]
        K = kernel_sizes[i]
        W_conv = W_conv.at[:K * Cin, i * Cout:(i + 1) * Cout].set(
            w_kco.reshape(K * Cin, Cout))

    # ---- fold conv biases into fc_seq bias: max(y+b) == max(y)+b, then linear through W_seq --
    bias_all = jnp.concatenate([b for (_, b) in params["convs"]])  # [C_all]
    b_seq_eff = params["fc_seq_b"] + bias_all @ params["fc_seq_w"]

    # ---- block-diagonal fused FC weight / bias (output order: seqs | network | description) --
    W_fc = jnp.zeros((D_in, out_pad), jnp.float32)
    W_fc = W_fc.at[:C_all, :hidden].set(params["fc_seq_w"])
    W_fc = W_fc.at[C_all:C_all + net_dim, hidden:2 * hidden].set(params["fc_network_w"])
    W_fc = W_fc.at[C_all + net_dim:, 2 * hidden:3 * hidden].set(params["fc_description_w"])
    b_fc = jnp.zeros((1, out_pad), jnp.float32)
    b_fc = b_fc.at[0, :hidden].set(b_seq_eff)
    b_fc = b_fc.at[0, hidden:2 * hidden].set(params["fc_network_b"])
    b_fc = b_fc.at[0, 2 * hidden:3 * hidden].set(params["fc_description_b"])

    # ---- non-sequence inputs, pre-concatenated on the host (network first, then description) -
    xnd = jnp.concatenate([x_vector, x_description], axis=1)       # [B, net+desc]

    kernel = _make_fused_kernel(B, R_pad, C_all)
    out_padded = pl.pallas_call(
        kernel,
        out_shape=jax.ShapeDtypeStruct((B, out_pad), jnp.float32),
        in_specs=[pl.BlockSpec(memory_space=pltpu.MemorySpace.VMEM)] * 6,
        out_specs=pl.BlockSpec(memory_space=pltpu.MemorySpace.VMEM),
    )(slab_flat, mask, xnd, W_conv, W_fc, b_fc)

    return out_padded[:, :out_dim]


# ----------------------------------------------------------------------------
# Pure-JAX reference (for correctness check)
# ----------------------------------------------------------------------------
def _reference_forward(params, x_ncl, x_description, x_vector):
    def lrelu(v):
        return jnp.where(v >= 0, v, 0.01 * v)

    seq_feats = []
    for (w_kco, b) in params["convs"]:
        w_oik = jnp.transpose(w_kco, (2, 1, 0))        # -> [Cout, Cin, K]
        y = lax.conv_general_dilated(
            x_ncl, w_oik, window_strides=(1,), padding="VALID",
            dimension_numbers=("NCH", "OIH", "NCH"))
        y = y + b[None, :, None]
        seq_feats.append(jnp.max(y, axis=2))
    seq_cat = jnp.concatenate(seq_feats, axis=1)
    f_seqs = lrelu(seq_cat @ params["fc_seq_w"] + params["fc_seq_b"])
    f_net = lrelu(x_vector @ params["fc_network_w"] + params["fc_network_b"])
    f_desc = lrelu(x_description @ params["fc_description_w"] + params["fc_description_b"])
    return jnp.concatenate([f_seqs, f_net, f_desc], axis=1)


if __name__ == "__main__":
    # Small, forward-consistent configuration
    B = 2
    seq_input_nc = 4       # conv in_channels
    seq_in_nc = 8          # conv out_channels
    seq_max_kernels = 33   # kernels = [8, 16, 24, 32]
    seq_length = 64
    hidden_dim = 32
    network_dim = 16
    description_dim = 16
    kernels = list(range(8, seq_max_kernels, 8))

    key = jax.random.PRNGKey(0)
    n_keys = 2 * len(kernels) + 6 + 3
    ks = list(jax.random.split(key, n_keys))

    params = {"convs": []}
    for i, K in enumerate(kernels):
        w = 0.1 * jax.random.normal(ks[2 * i], (K, seq_input_nc, seq_in_nc), jnp.float32)
        b = 0.1 * jax.random.normal(ks[2 * i + 1], (seq_in_nc,), jnp.float32)
        params["convs"].append((w, b))
    base = 2 * len(kernels)
    params["fc_seq_w"] = 0.1 * jax.random.normal(ks[base + 0], (len(kernels) * seq_in_nc, hidden_dim), jnp.float32)
    params["fc_seq_b"] = 0.1 * jax.random.normal(ks[base + 1], (hidden_dim,), jnp.float32)
    params["fc_network_w"] = 0.1 * jax.random.normal(ks[base + 2], (network_dim, hidden_dim), jnp.float32)
    params["fc_network_b"] = 0.1 * jax.random.normal(ks[base + 3], (hidden_dim,), jnp.float32)
    params["fc_description_w"] = 0.1 * jax.random.normal(ks[base + 4], (description_dim, hidden_dim), jnp.float32)
    params["fc_description_b"] = 0.1 * jax.random.normal(ks[base + 5], (hidden_dim,), jnp.float32)

    # Inputs (PyTorch layouts): x is NCL, vectors are [B, dim]
    x = jax.random.normal(ks[base + 6], (B, seq_input_nc, seq_length), jnp.float32)
    x_description = jax.random.normal(ks[base + 7], (B, description_dim), jnp.float32)
    x_vector = jax.random.normal(ks[base + 8], (B, network_dim), jnp.float32)

    out = bio_data_encoder_forward(params, x, x_description, x_vector)
    out = jax.block_until_ready(out)

    ref = jax.block_until_ready(_reference_forward(params, x, x_description, x_vector))
    assert out.shape == (B, 3 * hidden_dim), out.shape
    assert jnp.allclose(out, ref, atol=1e-4, rtol=1e-4), float(jnp.max(jnp.abs(out - ref)))

    print("KERNEL_OK")
</pallas_src>

<mosaic_0001>
module attributes {stable_mosaic.version = 11 : i64} {
  func.func @kernel(%arg0: memref<128x128xf32, #tpu.memory_space<vmem>>, %arg1: memref<128x32xf32, #tpu.memory_space<vmem>>, %arg2: memref<2x32xf32, #tpu.memory_space<vmem>>, %arg3: memref<128x32xf32, #tpu.memory_space<vmem>>, %arg4: memref<64x128xf32, #tpu.memory_space<vmem>>, %arg5: memref<1x128xf32, #tpu.memory_space<vmem>>, %arg6: memref<2x128xf32, #tpu.memory_space<vmem>>) attributes {dimension_semantics = [], scalar_prefetch = 0 : i64, scratch_operands = 0 : i64, tpu.core_type = #tpu.core_type<tc>} {
    %c0 = arith.constant 0 : index
    %c0_0 = arith.constant 0 : index
    %0 = vector.load %arg0[%c0, %c0_0] : memref<128x128xf32, #tpu.memory_space<vmem>>, vector<128x128xf32>
    %c0_1 = arith.constant 0 : index
    %c0_2 = arith.constant 0 : index
    %1 = vector.load %arg3[%c0_1, %c0_2] : memref<128x32xf32, #tpu.memory_space<vmem>>, vector<128x32xf32>
    %cst = arith.constant dense<0.000000e+00> : vector<128x32xf32>
    %2 = tpu.matmul %0, %1, %cst {dimension_numbers = #tpu.dot_dimension_numbers<[1], [0], [0], [1], [0, 0, 1, 1], [], []>} : vector<128x128xf32>, vector<128x32xf32>, vector<128x32xf32> -> vector<128x32xf32>
    %c0_3 = arith.constant 0 : index
    %c0_4 = arith.constant 0 : index
    %3 = vector.load %arg1[%c0_3, %c0_4] : memref<128x32xf32, #tpu.memory_space<vmem>>, vector<128x32xf32>
    %4 = arith.addf %2, %3 : vector<128x32xf32>
    %5 = vector.shape_cast %4 : vector<128x32xf32> to vector<2x64x32xf32>
    %cst_5 = arith.constant dense<0xFF800000> : vector<2x32xf32>
    %6 = vector.multi_reduction <maximumf>, %5, %cst_5 [1] : vector<2x64x32xf32> to vector<2x32xf32>
    %c0_6 = arith.constant 0 : index
    %c0_7 = arith.constant 0 : index
    %7 = vector.load %arg2[%c0_6, %c0_7] : memref<2x32xf32, #tpu.memory_space<vmem>>, vector<2x32xf32>
    %8 = tpu.concatenate %6, %7 in 1 : vector<2x32xf32>, vector<2x32xf32> -> vector<2x64xf32>
    %c0_8 = arith.constant 0 : index
    %c0_9 = arith.constant 0 : index
    %9 = vector.load %arg4[%c0_8, %c0_9] : memref<64x128xf32, #tpu.memory_space<vmem>>, vector<64x128xf32>
    %cst_10 = arith.constant dense<0.000000e+00> : vector<2x128xf32>
    %10 = tpu.matmul %8, %9, %cst_10 {dimension_numbers = #tpu.dot_dimension_numbers<[1], [0], [0], [1], [0, 0, 1, 1], [], []>} : vector<2x64xf32>, vector<64x128xf32>, vector<2x128xf32> -> vector<2x128xf32>
    %c0_11 = arith.constant 0 : index
    %c0_12 = arith.constant 0 : index
    %11 = vector.load %arg5[%c0_11, %c0_12] : memref<1x128xf32, #tpu.memory_space<vmem>>, vector<1x128xf32>
    %12 = vector.broadcast %11 : vector<1x128xf32> to vector<2x128xf32>
    %13 = arith.addf %10, %12 : vector<2x128xf32>
    %cst_13 = arith.constant 0.000000e+00 : f32
    %14 = vector.broadcast %cst_13 : f32 to vector<2x128xf32>
    %15 = arith.cmpf oge, %13, %14 : vector<2x128xf32>
    %cst_14 = arith.constant 0.00999999977 : f32
    %16 = vector.broadcast %cst_14 : f32 to vector<2x128xf32>
    %17 = arith.mulf %16, %13 : vector<2x128xf32>
    %18 = arith.select %15, %13, %17 : vector<2x128xi1>, vector<2x128xf32>
    %c0_15 = arith.constant 0 : index
    %c0_16 = arith.constant 0 : index
    %19 = vector.load %arg6[%c0_15, %c0_16] : memref<2x128xf32, #tpu.memory_space<vmem>>, vector<2x128xf32>
    tpu.vector_store %arg6[%c0_15, %c0_16], %18 {strides = array<i32>} : memref<2x128xf32, #tpu.memory_space<vmem>>, vector<2x128xf32>,
    return
  }
}

</mosaic_0001>

<bundles_post_ra>
// kernel: tpu_custom_call.1
= control target key start
LH: loop header
LB: loop body
LE: loop exit
PB: predicated region body
PF: predicated region fallthrough
CT: control target
= control target key end

     0   :  { %s522_s15 = smov 32   ;;  %s755_s0 = inlined_call_operand.vmem [shape: f32[128,128], index: 0, kind: input, shape index: {}]   ;;  %s756_s1 = inlined_call_operand.vmem [shape: f32[128,32], index: 1, kind: input, shape index: {}]   ;;  %s757_s2 = inlined_call_operand.vmem [shape: f32[2,32], index: 2, kind: input, shape index: {}]   ;;  %s758_s3 = inlined_call_operand.vmem [shape: f32[128,32], index: 3, kind: input, shape index: {}]   ;;  %s759_s4 = inlined_call_operand.vmem [shape: f32[64,128], index: 4, kind: input, shape index: {}]   ;;  %s760_s5 = inlined_call_operand.vmem [shape: f32[1,128], index: 5, kind: input, shape index: {}]   ;;  %s761_s6 = inlined_call_operand.hbm [shape: f32[2,128], index: 6, kind: output, shape index: {}]  }
   0x1   :  { %v55_v0 = vld [vmem:[%s758_s3 + $0x78] sm:$0xff]  ;;  %v54_v1 = vld [vmem:[%s758_s3 + $0x70] sm:$0xff]  ;;  %v53_v2 = vld [vmem:[%s758_s3 + $0x68] sm:$0xff] }
   0x2   :  { %421 = vmatprep.subr.mxu0 %v55_v0  ;;  %v52_v3 = vld [vmem:[%s758_s3 + $0x60] sm:$0xff]  ;;  %v51_v5 = vld [vmem:[%s758_s3 + $0x58] sm:$0xff]  ;;  %v50_v6 = vld [vmem:[%s758_s3 + $0x50] sm:$0xff] }
   0x3   :  { %422 = vmatpush3.msra.mxu0 %v55_v0  ;;  %v24_v4 = vld [vmem:[%s755_s0] sm:$0xff]  ;;  %v49_v7 = vld [vmem:[%s758_s3 + $0x48] sm:$0xff] }
   0x4   :  { %423 = vmatprep.subr.mxu0 %v54_v1  ;;  %453 = vmatprep.mubr.f32.mxu0 %v24_v4  ;;  %v260_v8 = vld [vmem:[%s757_s2] sm:$0x3] }
   0x5   :  { %424 = vmatpush3.msra.mxu0 %v54_v1  ;;  %267 = vrot.lane.b32.xlu0 %v260_v8, %s522_s15 }
   0x6   :  { %425 = vmatprep.subr.mxu0 %v53_v2 }
   0x7   :  { %426 = vmatpush3.msra.mxu0 %v53_v2 }
   0x8   :  { %427 = vmatprep.subr.mxu0 %v52_v3 }
   0x9   :  { %428 = vmatpush3.msra.mxu0 %v52_v3 }
   0xa   :  { %429 = vmatprep.subr.mxu0 %v51_v5 }
   0xb   :  { %430 = vmatpush3.msra.mxu0 %v51_v5 }
   0xc   :  { %431 = vmatprep.subr.mxu0 %v50_v6 }
   0xd   :  { %11 = vsyncpa [#allocation3], 0  ;;  %432 = vmatpush3.msra.mxu0 %v50_v6  ;;  %v48_v9 = vld [vmem:[%s758_s3 + $0x40] sm:$0xff]  ;;  %v47_v10 = vld [vmem:[%s758_s3 + $0x38] sm:$0xff]  ;;  %v523_v33 = vmov 0.0   ;;  %vm524_vm0 = vmmov 0  }
   0xe   :  { %433 = vmatprep.subr.mxu0 %v49_v7  ;;  %v46_v11 = vld [vmem:[%s758_s3 + $0x30] sm:$0xff]  ;;  %v45_v12 = vld [vmem:[%s758_s3 + $0x28] sm:$0xff]  ;;  %v44_v13 = vld [vmem:[%s758_s3 + $0x20] sm:$0xff]  ;;  %477 = vmatprep.subr.mxu1 %v523_v33  ;;  %vm217_vm1 = vcmask 261120   ;;  %vm263_vm2 = vcmask 1041409   ;;  %vm286_vm3 = vcmask 523264  }
   0xf   :  { %434 = vmatpush3.msra.mxu0 %v49_v7  ;;  %v43_v14 = vld [vmem:[%s758_s3 + $0x18] sm:$0xff]  ;;  %v42_v15 = vld [vmem:[%s758_s3 + $0x10] sm:$0xff]  ;;  %v41_v16 = vld [vmem:[%s758_s3 + $0x8] sm:$0xff]  ;;  %493 = vmatprep.mubr.msk.f32.mxu1 %vm524_vm0, %v523_v33  ;;  %s525_s7 = smov [#allocation2]  }
  0x10   :  { %435 = vmatprep.subr.mxu0 %v48_v9  ;;  %v40_v17 = vld [vmem:[%s758_s3] sm:$0xff]  ;;  %v25_v18 = vld [vmem:[%s755_s0 + $0x8] sm:$0xff]  ;;  %v26_v19 = vld [vmem:[%s755_s0 + $0x10] sm:$0xff] }
  0x11   :  { %436 = vmatpush3.msra.mxu0 %v48_v9  ;;  %v27_v20 = vld [vmem:[%s755_s0 + $0x18] sm:$0xff]  ;;  %v28_v21 = vld [vmem:[%s755_s0 + $0x20] sm:$0xff]  ;;  %v29_v22 = vld [vmem:[%s755_s0 + $0x28] sm:$0xff] }
  0x12   :  { %437 = vmatprep.subr.mxu0 %v47_v10  ;;  %v30_v23 = vld [vmem:[%s755_s0 + $0x30] sm:$0xff]  ;;  %v31_v24 = vld [vmem:[%s755_s0 + $0x38] sm:$0xff]  ;;  %v32_v25 = vld [vmem:[%s755_s0 + $0x40] sm:$0xff] }
  0x13   :  { %438 = vmatpush3.msra.mxu0 %v47_v10  ;;  %v33_v26 = vld [vmem:[%s755_s0 + $0x48] sm:$0xff]  ;;  %v34_v27 = vld [vmem:[%s755_s0 + $0x50] sm:$0xff]  ;;  %v35_v28 = vld [vmem:[%s755_s0 + $0x58] sm:$0xff] }
  0x14   :  { %439 = vmatprep.subr.mxu0 %v46_v11  ;;  %v36_v29 = vld [vmem:[%s755_s0 + $0x60] sm:$0xff]  ;;  %v37_v30 = vld [vmem:[%s755_s0 + $0x68] sm:$0xff]  ;;  %v38_v31 = vld [vmem:[%s755_s0 + $0x70] sm:$0xff] }
  0x15   :  { %440 = vmatpush3.msra.mxu0 %v46_v11  ;;  %v39_v32 = vld [vmem:[%s755_s0 + $0x78] sm:$0xff]  ;;  %v277_v35 = vld [vmem:[%s759_s4 + $0x30] sm:$0xff]  ;;  %v276_v36 = vld [vmem:[%s759_s4 + $0x28] sm:$0xff] }
  0x16   :  { %441 = vmatprep.subr.mxu0 %v45_v12  ;;  %v278_v34 = vld [vmem:[%s759_s4 + $0x38] sm:$0xff]  ;;  %v275_v37 = vld [vmem:[%s759_s4 + $0x20] sm:$0xff]  ;;  %v273_v39 = vld [vmem:[%s759_s4 + $0x10] sm:$0xff] }
  0x17   :  { %442 = vmatpush3.msra.mxu0 %v45_v12  ;;  %478 = vmatpush3.msra.mxu1 %v278_v34  ;;  %v274_v38 = vld [vmem:[%s759_s4 + $0x18] sm:$0xff]  ;;  %v272_v40 = vld [vmem:[%s759_s4 + $0x8] sm:$0xff]  ;;  %v271_v41 = vld [vmem:[%s759_s4] sm:$0xff]  ;;  %s370_s4 = sshll.u32 %s525_s7, 4  ;;  %s371_s4 = int_to_ptr.vmem [resolvable:$true] %s370_s4 }
  0x18   :  { %443 = vmatprep.subr.mxu0 %v44_v13  ;;  %479 = vmatprep.subr.mxu1 %v523_v33  ;;  %v58_v46 = vld [vmem:[%s756_s1 + $0x10] sm:$0xff]  ;;  %v56_v47 = vld [vmem:[%s756_s1] sm:$0xff]  ;;  %v59_v48 = vld [vmem:[%s756_s1 + $0x18] sm:$0xff]  ;;  %s500_s8 = scalar_lea.vmem %s371_s4, 32  ;;  %p505_p1 = scmp.lt.s32.totalorder %s371_s4, %s371_s4 }
  0x19   :  { %444 = vmatpush3.msra.mxu0 %v44_v13  ;;  %480 = vmatpush3.msra.mxu1 %v277_v35  ;;  %v60_v50 = vld [vmem:[%s756_s1 + $0x20] sm:$0xff]  ;;  %v57_v52 = vld [vmem:[%s756_s1 + $0x8] sm:$0xff]  ;;  %v63_v58 = vld [vmem:[%s756_s1 + $0x38] sm:$0xff]  ;;  %p501_p0 = scmp.ne.s32.totalorder %s371_s4, %s500_s8  ;;  %p506_p2 = scmp.lt.s32.totalorder %s500_s8, %s500_s8 }
  0x1a   :  { %445 = vmatprep.subr.mxu0 %v43_v14  ;;  %481 = vmatprep.subr.mxu1 %v523_v33  ;;  %v61_v54 = vld [vmem:[%s756_s1 + $0x28] sm:$0xff]  ;;  %v62_v60 = vld [vmem:[%s756_s1 + $0x30] sm:$0xff]  ;;  %v71_v34 = vld [vmem:[%s756_s1 + $0x78] sm:$0xff] }
  0x1b   :  { %446 = vmatpush3.msra.mxu0 %v43_v14  ;;  %482 = vmatpush3.msra.mxu1 %v276_v36  ;;  %p507_p3 = por %p506_p2, %p505_p1 }
  0x1c   :  { %447 = vmatprep.subr.mxu0 %v42_v15  ;;  %483 = vmatprep.subr.mxu1 %v523_v33 }
  0x1d   :  { %448 = vmatpush3.msra.mxu0 %v42_v15  ;;  %484 = vmatpush3.msra.mxu1 %v275_v37  ;;  %p508_p4 = pnand %p507_p3, %p501_p0 }
  0x1e   :  { %449 = vmatprep.subr.mxu0 %v41_v16  ;;  %485 = vmatprep.subr.mxu1 %v523_v33 }
  0x1f   :  { %450 = vmatpush3.msra.mxu0 %v41_v16  ;;  %486 = vmatpush3.msra.mxu1 %v274_v38 }
  0x20   :  { %451 = vmatprep.subr.mxu0 %v40_v17  ;;  %487 = vmatprep.subr.mxu1 %v523_v33 }
  0x21   :  { %452 = vmatpush3.msra.mxu0 %v40_v17  ;;  %488 = vmatpush3.msra.mxu1 %v273_v39  ;;  %v67_v17 = vld [vmem:[%s756_s1 + $0x58] sm:$0xff] }
  0x22   :  { %454 = vmatmul.mubr.f32.vlgmr.msra.gmra.mxu0 %v25_v18  ;;  %489 = vmatprep.subr.mxu1 %v523_v33 }
  0x23   :  { %456 = vmatprep.mubr.f32.mxu0 %v26_v19  ;;  %490 = vmatpush3.msra.mxu1 %v272_v40  ;;  %v66_v19 = vld [vmem:[%s756_s1 + $0x50] sm:$0xff] }
  0x24   :  { %491 = vmatprep.subr.mxu1 %v523_v33 }
  0x25   :  { %492 = vmatpush3.msra.mxu1 %v271_v41  ;;  %v70_v41 = vld [vmem:[%s756_s1 + $0x70] sm:$0xff] }
  0x26   :  { %457 = vmatmul.mubr.f32.gmra.mxu0 %v27_v20  ;;  %v65_v20 = vld [vmem:[%s756_s1 + $0x48] sm:$0xff] }
  0x27   :  { %459 = vmatprep.mubr.f32.mxu0 %v28_v21 }
  0x2a   :  { %460 = vmatmul.mubr.f32.gmra.mxu0 %v29_v22  ;;  %v64_v22 = vld [vmem:[%s756_s1 + $0x40] sm:$0xff] }
  0x2b   :  { %462 = vmatprep.mubr.f32.mxu0 %v30_v23 }
  0x2e   :  { %463 = vmatmul.mubr.f32.gmra.mxu0 %v31_v24  ;;  %v69_v24 = vld [vmem:[%s756_s1 + $0x68] sm:$0xff] }
  0x2f   :  { %465 = vmatprep.mubr.f32.mxu0 %v32_v25 }
  0x32   :  { %466 = vmatmul.mubr.f32.gmra.mxu0 %v33_v26 }
  0x33   :  { %468 = vmatprep.mubr.f32.mxu0 %v34_v27 }
  0x36   :  { %469 = vmatmul.mubr.f32.gmra.mxu0 %v35_v28 }
  0x37   :  { %471 = vmatprep.mubr.f32.mxu0 %v36_v29 }
  0x3a   :  { %472 = vmatmul.mubr.f32.gmra.mxu0 %v37_v30  ;;  %v68_v30 = vld [vmem:[%s756_s1 + $0x60] sm:$0xff] }
  0x3b   :  { %474 = vmatprep.mubr.f32.mxu0 %v38_v31 }
  0x3e   :  { %475 = vmatmul.mubr.f32.gmra.mxu0 %v39_v32 }
  0xe2   :  { %v455_v42 = vpop.f32.mrf.mxu0 }
  0xe3   :  { %v144_v61 = vadd.f32 %v455_v42, %v57_v52 }
  0xe4   :  { %v138_v43 = vpop.f32.mrf.mxu0 }
  0xe5   :  { %v139_v53 = vadd.f32 %v138_v43, %v56_v47  ;;  %v219_v8 = vsel %vm217_vm1, %v144_v61, -inf }
  0xe6   :  { %v458_v44 = vpop.f32.mrf.mxu0 }
  0xe7   :  { %v154_v56 = vadd.f32 %v458_v44, %v59_v48  ;;  %v218_v0 = vsel %vm217_vm1, %v139_v53, -inf }
  0xe8   :  { %v148_v45 = vpop.f32.mrf.mxu0 }
  0xe9   :  { %v149_v51 = vadd.f32 %v148_v45, %v58_v46  ;;  %v222_v2 = vsel %vm217_vm1, %v154_v56, -inf }
  0xea   :  { %v461_v49 = vpop.f32.mrf.mxu0  ;;  %v223_v11 = vmax.f32 %v219_v8, %v222_v2 }
  0xeb   :  { %v220_v62 = vsel %vm217_vm1, %v149_v51, -inf  ;;  %v164_v63 = vadd.f32 %v461_v49, %v61_v54 }
  0xec   :  { %v158_v55 = vpop.f32.mrf.mxu0  ;;  %v221_v6 = vmax.f32 %v218_v0, %v220_v62 }
  0xed   :  { %v159_v57 = vadd.f32 %v158_v55, %v60_v50  ;;  %v226_v9 = vsel %vm217_vm1, %v164_v63, -inf }
  0xee   :  { %v464_v59 = vpop.f32.mrf.mxu0  ;;  %v227_v15 = vmax.f32 %v223_v11, %v226_v9 }
  0xef   :  { %v224_v3 = vsel %vm217_vm1, %v159_v57, -inf  ;;  %v174_v4 = vadd.f32 %v464_v59, %v63_v58 }
  0xf0   :  { %v168_v1 = vpop.f32.mrf.mxu0  ;;  %v225_v12 = vmax.f32 %v221_v6, %v224_v3 }
  0xf1   :  { %v169_v5 = vadd.f32 %v168_v1, %v62_v60  ;;  %v230_v14 = vsel %vm217_vm1, %v174_v4, -inf  ;;  %v268_v4 = vpop.permute.xlu0 %267 }
  0xf2   :  { %v467_v7 = vpop.f32.mrf.mxu0  ;;  %v231_v21 = vmax.f32 %v227_v15, %v230_v14 }
  0xf3   :  { %v228_v10 = vsel %vm217_vm1, %v169_v5, -inf  ;;  %v184_v28 = vadd.f32 %v467_v7, %v65_v20  ;;  %v378_v7 = vld [vmem:[%s760_s5] ss:$0 sm:$0xff] }
  0xf4   :  { %v178_v13 = vpop.f32.mrf.mxu0  ;;  %v229_v16 = vmax.f32 %v225_v12, %v228_v10 }
  0xf5   :  { %v179_v31 = vadd.f32 %v178_v13, %v64_v22  ;;  %v240_v39 = vsel %vm217_vm1, %v184_v28, -inf }
  0xf6   :  { %v470_v18 = vpop.f32.mrf.mxu0  ;;  %v232_v27 = vmax.f32 %v229_v16, %v231_v21 }
  0xf7   :  { %v194_v25 = vadd.f32 %v470_v18, %v67_v17  ;;  %v239_v42 = vsel %vm217_vm1, %v179_v31, -inf }
  0xf8   :  { %v188_v23 = vpop.f32.mrf.mxu0  ;;  %v233_v38 = vrot.slane %v232_v27, 4 }
  0xf9   :  { %v189_v26 = vadd.f32 %v188_v23, %v66_v19  ;;  %v243_v35 = vsel %vm217_vm1, %v194_v25, -inf }
  0xfa   :  { %v473_v29 = vpop.f32.mrf.mxu0  ;;  %v244_v46 = vmax.f32 %v240_v39, %v243_v35  ;;  %v234_v51 = vmax.f32 %v232_v27, %v233_v38 }
  0xfb   :  { %v204_v32 = vadd.f32 %v473_v29, %v69_v24  ;;  %v241_v36 = vsel %vm217_vm1, %v189_v26, -inf }
  0xfc   :  { %v198_v33 = vpop.f32.mrf.mxu0  ;;  %v242_v47 = vmax.f32 %v239_v42, %v241_v36  ;;  %v235_v57 = vrot.slane %v234_v51, 2 }
  0xfd   :  { %v199_v37 = vadd.f32 %v198_v33, %v68_v30  ;;  %v247_v43 = vsel %vm217_vm1, %v204_v32, -inf }
  0xfe   :  { %v476_v40 = vpop.f32.mrf.mxu0  ;;  %v248_v52 = vmax.f32 %v244_v46, %v247_v43  ;;  %v236_v60 = vmax.f32 %v234_v51, %v235_v57 }
  0xff   :  { %v245_v44 = vsel %vm217_vm1, %v199_v37, -inf  ;;  %v214_v45 = vadd.f32 %v476_v40, %v71_v34 }
 0x100   :  { %v208_v48 = vpop.f32.mrf.mxu0  ;;  %v246_v53 = vmax.f32 %v242_v47, %v245_v44  ;;  %v237_v0 = vrot.slane %v236_v60, 1 }
 0x101   :  { %v251_v49 = vsel %vm217_vm1, %v214_v45, -inf  ;;  %v209_v50 = vadd.f32 %v208_v48, %v70_v41 }
 0x102   :  { %v252_v55 = vmax.f32 %v248_v52, %v251_v49  ;;  %v238_v2 = vmax.f32 %v236_v60, %v237_v0 }
 0x103   :  { %v249_v54 = vsel %vm217_vm1, %v209_v50, -inf }
 0x104   :  { %v250_v56 = vmax.f32 %v246_v53, %v249_v54 }
 0x106   :  { %v253_v58 = vmax.f32 %v250_v56, %v252_v55 }
 0x108   :  { %v254_v59 = vrot.slane %v253_v58, 4 }
 0x10a   :  { %v255_v61 = vmax.f32 %v253_v58, %v254_v59 }
 0x10c   :  { %v256_v62 = vrot.slane %v255_v61, 2 }
 0x10e   :  { %v257_v63 = vmax.f32 %v255_v61, %v256_v62 }
 0x110   :  { %v258_v1 = vrot.slane %v257_v63, 1 }
 0x112   :  { %v259_v3 = vmax.f32 %v257_v63, %v258_v1 }
 0x114   :  { %v264_v5 = vsel %vm263_vm2, %v259_v3, %v238_v2 }
 0x115   :  { %v270_v6 = vsel %vm217_vm1, %v264_v5, %v268_v4 }
 0x116   :  { %494 = vmatmul.mubr.msk.f32.vlgmr.msra.gmra.mxu1 %vm286_vm3, %v270_v6 }
 0x1d6   :  { %v356_v8 = vpop.f32.mrf.mxu1 }
 0x1d7   :  { %v357_v9 = vadd.f32 %v378_v7, %v356_v8 }
 0x1d8   :  { %v495_v10 = vpop.f32.mrf.mxu1 }
 0x1d9   :  { %v361_v11 = vmul.f32 0.01, %v357_v9  ;;  %vm360_vm4 = vcmp.ge.f32.partialorder %v357_v9, 0.0 }
 0x1db   :  { %v362_v12 = vsel %vm360_vm4, %v357_v9, %v361_v11 }
 0x1dc   :  { %363 = vst [vmem:[#allocation2] sm:$0x3] %v362_v12 }
 0x1dd   :  { %511 = shalt.err (!%p508_p4)
}
 0x1de   :  { %373 = dma.vmem_to_hbm [thread:$0]  %s371_s4, 32, %s761_s6, [#allocation3]  }
 0x1df   :  { %520 = dma.done.wait [#allocation3], 32  }
 0x1e0   :  { %521 = vsyncadd [#allocation3], 4294967264 }
 0x1e1   :  { %377 = vsyncpa [#allocation3], 1 }

</bundles_post_ra>
